<compile_context>
chip_gen: v5e
topology: v5e:2x2
jax: 0.10.0
libtpu: 0.0.40
codegen_flags: <defaults>
</compile_context>

<pallas_src>
import functools

import jax
import jax.numpy as jnp
from jax.experimental import pallas as pl
from jax.experimental.pallas import tpu as pltpu


def _round_up(x, m):
    return (x + m - 1) // m * m


def _vmem_capacity_bytes():
    """Physical VMEM per core; conservative 64 MiB (v7x) fallback."""
    try:
        info = pltpu.get_tpu_info()
        for name in ("vmem_capacity_bytes", "vmem_size_bytes", "vmem_bytes"):
            v = getattr(info, name, None)
            if v:
                return int(v)
    except Exception:
        pass
    return 64 * 1024 * 1024


def _pick_col_tile(d, max_tn=1024):
    """Output-column tile for the weight slab.

    Only tile when the double-buffered bf16 weight would exceed ~8 MiB and D is
    128-aligned; pick the largest 128-multiple divisor of D that is <= max_tn so
    every column block is exact (no OOB residual slicing, no partial W blocks).
    """
    if d % 128 != 0 or 4 * d * d <= 8 * 1024 * 1024:
        return d
    best = 128
    t = 128
    while t <= min(max_tn, d):
        if d % t == 0:
            best = t
        t += 128
    return best


def _hash_u32(idx, seed):
    # lowbias32 counter-based hash: grid-invariant, works on TPU and interpret.
    h = idx * jnp.uint32(0x9E3779B1) + seed
    h = h ^ (h >> 16)
    h = h * jnp.uint32(0x7FEB352D)
    h = h ^ (h >> 15)
    h = h * jnp.uint32(0x846CA68B)
    h = h ^ (h >> 16)
    return h


def residual_connection_kernel(seed_ref, x_ref, w_ref, b_ref, o_ref, normed_ref, *,
                               dropout_p, eps, train, hidden, col_tile):
    j = pl.program_id(1)                 # output-column block (innermost axis)
    tile = o_ref.shape[0]                # row-tile size
    tn = o_ref.shape[1]                  # column-tile size

    # ---- LayerNorm (no affine: gamma/beta folded into W/b in the wrapper) ----
    # Compute once per row tile and cache bf16 normalized rows in VMEM scratch;
    # reused for every column slab j > 0.
    @pl.when(j == 0)
    def _():
        x = x_ref[...].astype(jnp.float32)
        mean = jnp.mean(x, axis=-1, keepdims=True)
        centered = x - mean
        var = jnp.mean(centered * centered, axis=-1, keepdims=True)
        normed_ref[...] = (centered * jax.lax.rsqrt(var + eps)).astype(jnp.bfloat16)

    # ---- sublayer Linear slab: (tile, D) @ (D, tn) on the MXU, f32 accum ----
    y = jnp.dot(normed_ref[...], w_ref[...], preferred_element_type=jnp.float32)
    y = y + b_ref[...].astype(jnp.float32)

    # ---- dropout (train mode only; eval mode is identity, like nn.Dropout) ----
    if train and dropout_p > 0.0:
        if dropout_p >= 1.0:
            y = jnp.zeros_like(y)        # PyTorch zeroes output at p = 1.0
        else:
            seed = seed_ref[0].astype(jnp.uint32)
            row0 = (pl.program_id(0) * tile).astype(jnp.uint32)
            if tn % 4 == 0 and (tn // 4) % 128 == 0:
                # 4x-amortized path: one 32-bit hash per 4 elements; compare its
                # 4 bytes against an 8-bit threshold (lane-aligned byte planes).
                g = tn // 4
                col0 = (j * g).astype(jnp.uint32)
                rows_i = jax.lax.broadcasted_iota(jnp.int32, (tile, g), 0).astype(jnp.uint32)
                cols_i = jax.lax.broadcasted_iota(jnp.int32, (tile, g), 1).astype(jnp.uint32)
                gidx = (rows_i + row0) * jnp.uint32(hidden // 4) + (cols_i + col0)
                h = _hash_u32(gidx, seed)
                thr8 = min(max(int(round(dropout_p * 256.0)), 0), 255)
                planes = [(h >> jnp.uint32(8 * k)) & jnp.uint32(0xFF) for k in range(4)]
                keep = jnp.concatenate(planes, axis=-1) >= jnp.uint32(thr8)
                scale = jnp.float32(256.0 / (256.0 - thr8))   # unbiased wrt quantized p
            else:
                # Fallback: per-element 32-bit hash with exact threshold.
                col0 = (j * tn).astype(jnp.uint32)
                rows_i = jax.lax.broadcasted_iota(jnp.int32, (tile, tn), 0).astype(jnp.uint32)
                cols_i = jax.lax.broadcasted_iota(jnp.int32, (tile, tn), 1).astype(jnp.uint32)
                idx = (rows_i + row0) * jnp.uint32(hidden) + (cols_i + col0)
                h = _hash_u32(idx, seed)
                thr = jnp.uint32(min(int(dropout_p * (2 ** 32)), 2 ** 32 - 1))
                keep = h >= thr
                scale = jnp.float32(1.0 / (1.0 - dropout_p))
            y = jnp.where(keep, y * scale, jnp.float32(0.0))

    # ---- residual add on this column slab ----
    if col_tile == hidden:
        x_cols = x_ref[...]
    else:
        col_start = pl.multiple_of(j * col_tile, 128)     # col_tile % 128 == 0 here
        x_cols = x_ref[:, pl.ds(col_start, col_tile)]
    o_ref[...] = (x_cols.astype(jnp.float32) + y).astype(o_ref.dtype)


def residual_connection(x, gamma, beta, w, b, *, dropout_p, train, seed=0,
                        eps=1e-5, row_tile=None):
    """x: (B, S, D). Returns x + dropout(linear(layernorm(x)))."""
    B, S, D = x.shape
    rows = B * S

    cap = _vmem_capacity_bytes()
    budget = int(cap * 0.7)                       # headroom for compiler scratch

    if row_tile is None:
        # 128 MiB parts (v5e/v6e): bigger tiles -> longer DMA bursts; v7x stays at 256.
        row_tile = 512 if cap >= 96 * 1024 * 1024 else 256
    row_tile = max(8, _round_up(int(row_tile), 8))

    tn = _pick_col_tile(D)

    # Row tile: whole rows if they fit in one block (block == full dim is always
    # legal), else a multiple-of-8 tile; no wrapper-side padding — Pallas masks
    # the partial last block and rows are independent.
    tile = rows if rows <= row_tile else row_tile

    def _footprint(t):
        return (2 * t * D * x.dtype.itemsize      # x tile, double-buffered
                + 2 * t * tn * x.dtype.itemsize   # out tile, double-buffered
                + 2 * D * tn * 2                  # bf16 weight slab, double-buffered
                + 2 * tn * 4                      # bias slab
                + t * D * 2)                      # bf16 normed scratch

    while tile > 64 and _footprint(tile) > budget:
        tile = max(64, _round_up(tile // 2, 8))

    vmem_limit = max(32 * 1024 * 1024,
                     min(_footprint(tile) + 8 * 1024 * 1024, budget))

    x2 = x.reshape(rows, D)

    # Fold the LayerNorm affine into the linear sublayer (free wrapper math):
    #   (gamma*n + beta) @ W + b  ==  n @ (gamma[:,None]*W) + (beta @ W + b)
    w_folded = (gamma.astype(jnp.float32)[:, None]
                * w.astype(jnp.float32)).astype(jnp.bfloat16)
    b_folded = (beta.astype(jnp.float32) @ w.astype(jnp.float32)
                + b.astype(jnp.float32)).reshape(1, D)
    seed_arr = jnp.array([seed], dtype=jnp.int32)

    kernel = functools.partial(residual_connection_kernel,
                               dropout_p=float(dropout_p), eps=float(eps),
                               train=bool(train), hidden=int(D),
                               col_tile=int(tn))

    grid = (pl.cdiv(rows, tile), pl.cdiv(D, tn))   # column axis innermost (x reuse)
    out = pl.pallas_call(
        kernel,
        out_shape=jax.ShapeDtypeStruct((rows, D), x.dtype),
        grid=grid,
        in_specs=[
            pl.BlockSpec(memory_space=pltpu.MemorySpace.SMEM),   # seed (scalar)
            pl.BlockSpec((tile, D), lambda i, j: (i, 0)),        # x rows (kept across j)
            pl.BlockSpec((D, tn), lambda i, j: (0, j)),          # bf16 weight slab
            pl.BlockSpec((1, tn), lambda i, j: (0, j)),          # folded bias slab
        ],
        out_specs=pl.BlockSpec((tile, tn), lambda i, j: (i, j)),
        scratch_shapes=[pltpu.VMEM((tile, D), jnp.bfloat16)],    # cached normed rows
        compiler_params=pltpu.CompilerParams(
            dimension_semantics=("parallel", "arbitrary"),
            vmem_limit_bytes=int(vmem_limit)),
    )(seed_arr, x2, w_folded, b_folded)

    return out.reshape(B, S, D)


def _reference_eval(x, gamma, beta, w, b, eps=1e-5):
    """Pure-JAX reference for eval mode (dropout = identity), bf16-matched matmul."""
    mean = jnp.mean(x, axis=-1, keepdims=True)
    var = jnp.mean((x - mean) ** 2, axis=-1, keepdims=True)
    normed = (x - mean) * jax.lax.rsqrt(var + eps)
    w_f = (gamma.astype(jnp.float32)[:, None] * w).astype(jnp.bfloat16).astype(jnp.float32)
    b_f = beta @ w + b
    y = jnp.dot(normed.astype(jnp.bfloat16).astype(jnp.float32), w_f) + b_f
    return x + y


if __name__ == "__main__":
    B, S, D = 2, 8, 32
    dropout_p = 0.1

    key = jax.random.PRNGKey(0)
    kx, kw = jax.random.split(key)
    x = jax.random.normal(kx, (B, S, D), dtype=jnp.float32)

    # Deterministic parameter init (LayerNorm defaults + a small linear sublayer).
    gamma = jnp.ones((D,), jnp.float32)
    beta = jnp.zeros((D,), jnp.float32)
    w = jax.random.normal(kw, (D, D), dtype=jnp.float32) * (1.0 / jnp.sqrt(D))
    b = jnp.zeros((D,), jnp.float32)

    # Eval mode (dropout is identity) -> verify against pure-JAX reference.
    out_eval = residual_connection(x, gamma, beta, w, b,
                                   dropout_p=dropout_p, train=False)
    jax.block_until_ready(out_eval)
    ref = _reference_eval(x, gamma, beta, w, b)
    assert jnp.allclose(out_eval, ref, atol=1e-3, rtol=1e-3), "mismatch vs reference"

    # Train mode (in-kernel counter-based hash dropout, fixed seed).
    out_train = residual_connection(x, gamma, beta, w, b,
                                    dropout_p=dropout_p, train=True, seed=1234)
    jax.block_until_ready(out_train)
    assert bool(jnp.all(jnp.isfinite(out_train))), "non-finite train output"

    print("KERNEL_OK")
</pallas_src>

<mosaic_0001>
module attributes {stable_mosaic.version = 11 : i64} {
  func.func @residual_connection_kernel(%arg0: i32, %arg1: i32, %arg2: memref<1xi32, #tpu.memory_space<smem>>, %arg3: memref<16x32xf32, #tpu.memory_space<vmem>>, %arg4: memref<32x32xbf16, #tpu.memory_space<vmem>>, %arg5: memref<1x32xf32, #tpu.memory_space<vmem>>, %arg6: memref<16x32xf32, #tpu.memory_space<vmem>>, %arg7: memref<16x32xbf16, #tpu.memory_space<vmem>>) attributes {dimension_semantics = [#tpu.dimension_semantics<parallel>, #tpu.dimension_semantics<arbitrary>], iteration_bounds = array<i64: 1, 1>, scalar_prefetch = 0 : i64, scratch_operands = 1 : i64, tpu.core_type = #tpu.core_type<tc>, window_params = [{transform_indices = @transform_0, window_bounds = array<i64: 1>}, {transform_indices = @transform_1, window_bounds = array<i64: 16, 32>}, {transform_indices = @transform_2, window_bounds = array<i64: 32, 32>}, {transform_indices = @transform_3, window_bounds = array<i64: 1, 32>}, {transform_indices = @transform_4, window_bounds = array<i64: 16, 32>}]} {
    %c0_i32 = arith.constant 0 : i32
    %0 = arith.cmpi eq, %arg1, %c0_i32 : i32
    %1 = arith.extui %0 : i1 to i32
    %c0_i32_0 = arith.constant 0 : i32
    %2 = arith.cmpi ne, %1, %c0_i32_0 : i32
    scf.if %2 {
      %c0_10 = arith.constant 0 : index
      %c0_11 = arith.constant 0 : index
      %12 = vector.load %arg3[%c0_10, %c0_11] : memref<16x32xf32, #tpu.memory_space<vmem>>, vector<16x32xf32>
      %cst_12 = arith.constant dense<0.000000e+00> : vector<16xf32>
      %13 = vector.multi_reduction <add>, %12, %cst_12 [1] : vector<16x32xf32> to vector<16xf32>
      %14 = vector.shape_cast %13 : vector<16xf32> to vector<16x1xf32>
      %cst_13 = arith.constant 3.200000e+01 : f32
      %15 = vector.broadcast %cst_13 : f32 to vector<16x1xf32>
      %16 = arith.divf %14, %15 : vector<16x1xf32>
      %17 = vector.broadcast %16 : vector<16x1xf32> to vector<16x32xf32>
      %18 = arith.subf %12, %17 : vector<16x32xf32>
      %19 = arith.mulf %18, %18 : vector<16x32xf32>
      %cst_14 = arith.constant dense<0.000000e+00> : vector<16xf32>
      %20 = vector.multi_reduction <add>, %19, %cst_14 [1] : vector<16x32xf32> to vector<16xf32>
      %21 = vector.shape_cast %20 : vector<16xf32> to vector<16x1xf32>
      %cst_15 = arith.constant 3.200000e+01 : f32
      %22 = vector.broadcast %cst_15 : f32 to vector<16x1xf32>
      %23 = arith.divf %21, %22 : vector<16x1xf32>
      %cst_16 = arith.constant 9.99999974E-6 : f32
      %24 = vector.broadcast %cst_16 : f32 to vector<16x1xf32>
      %25 = arith.addf %23, %24 : vector<16x1xf32>
      %26 = math.rsqrt %25 : vector<16x1xf32>
      %27 = vector.broadcast %26 : vector<16x1xf32> to vector<16x32xf32>
      %28 = arith.mulf %18, %27 : vector<16x32xf32>
      %29 = arith.truncf %28 : vector<16x32xf32> to vector<16x32xbf16>
      %c0_17 = arith.constant 0 : index
      %c0_18 = arith.constant 0 : index
      %30 = vector.load %arg7[%c0_17, %c0_18] : memref<16x32xbf16, #tpu.memory_space<vmem>>, vector<16x32xbf16>
      tpu.vector_store %arg7[%c0_17, %c0_18], %29 {strides = array<i32>} : memref<16x32xbf16, #tpu.memory_space<vmem>>, vector<16x32xbf16>,
    } else {
    }
    %c0 = arith.constant 0 : index
    %c0_1 = arith.constant 0 : index
    %3 = vector.load %arg7[%c0, %c0_1] : memref<16x32xbf16, #tpu.memory_space<vmem>>, vector<16x32xbf16>
    %c0_2 = arith.constant 0 : index
    %c0_3 = arith.constant 0 : index
    %4 = vector.load %arg4[%c0_2, %c0_3] : memref<32x32xbf16, #tpu.memory_space<vmem>>, vector<32x32xbf16>
    %cst = arith.constant dense<0.000000e+00> : vector<16x32xf32>
    %5 = tpu.matmul %3, %4, %cst {dimension_numbers = #tpu.dot_dimension_numbers<[1], [0], [0], [1], [0, 0, 1, 1], [], []>} : vector<16x32xbf16>, vector<32x32xbf16>, vector<16x32xf32> -> vector<16x32xf32>
    %c0_4 = arith.constant 0 : index
    %c0_5 = arith.constant 0 : index
    %6 = vector.load %arg5[%c0_4, %c0_5] : memref<1x32xf32, #tpu.memory_space<vmem>>, vector<1x32xf32>
    %7 = vector.broadcast %6 : vector<1x32xf32> to vector<16x32xf32>
    %8 = arith.addf %5, %7 : vector<16x32xf32>
    %c0_6 = arith.constant 0 : index
    %c0_7 = arith.constant 0 : index
    %9 = vector.load %arg3[%c0_6, %c0_7] : memref<16x32xf32, #tpu.memory_space<vmem>>, vector<16x32xf32>
    %10 = arith.addf %9, %8 : vector<16x32xf32>
    %c0_8 = arith.constant 0 : index
    %c0_9 = arith.constant 0 : index
    %11 = vector.load %arg6[%c0_8, %c0_9] : memref<16x32xf32, #tpu.memory_space<vmem>>, vector<16x32xf32>
    tpu.vector_store %arg6[%c0_8, %c0_9], %10 {strides = array<i32>} : memref<16x32xf32, #tpu.memory_space<vmem>>, vector<16x32xf32>,
    return
  }
  func.func @transform_0(%arg0: i32, %arg1: i32) -> i32 {
    %c0_i32 = arith.constant 0 : i32
    %c0_i32_0 = arith.constant 0 : i32
    return %c0_i32 : i32
  }
  func.func @transform_1(%arg0: i32, %arg1: i32) -> (i32, i32) {
    %c0_i32 = arith.constant 0 : i32
    %c0_i32_0 = arith.constant 0 : i32
    return %arg0, %c0_i32 : i32, i32
  }
  func.func @transform_2(%arg0: i32, %arg1: i32) -> (i32, i32) {
    %c0_i32 = arith.constant 0 : i32
    %c0_i32_0 = arith.constant 0 : i32
    return %c0_i32, %arg1 : i32, i32
  }
  func.func @transform_3(%arg0: i32, %arg1: i32) -> (i32, i32) {
    %c0_i32 = arith.constant 0 : i32
    %c0_i32_0 = arith.constant 0 : i32
    return %c0_i32, %arg1 : i32, i32
  }
  func.func @transform_4(%arg0: i32, %arg1: i32) -> (i32, i32) {
    %c0_i32 = arith.constant 0 : i32
    return %arg0, %arg1 : i32, i32
  }
}

</mosaic_0001>

<bundles_post_ra>
// kernel: tpu_custom_call.1
= control target key start
LH: loop header
LB: loop body
LE: loop exit
PB: predicated region body
PF: predicated region fallthrough
CT: control target
= control target key end

     0   :  { %10 = vsyncpa [#allocation5], 0  ;;  %s363_s0 = inlined_call_operand.<no memory space> [shape: s32[1], index: 0, kind: input, shape index: {}]   ;;  %s364_s1 = inlined_call_operand.hbm [shape: f32[16,32], index: 1, kind: input, shape index: {}]   ;;  %s365_s2 = inlined_call_operand.hbm [shape: bf16[32,32], index: 2, kind: input, shape index: {}]   ;;  %s366_s3 = inlined_call_operand.vmem [shape: f32[1,32], index: 3, kind: input, shape index: {}]   ;;  %s367_s4 = inlined_call_operand.hbm [shape: f32[16,32], index: 4, kind: output, shape index: {}]  }
   0x1   :  { %11 = vsyncpa [#allocation8], 0 }
   0x2   :  { %12 = vsyncpa [#allocation6], 0  ;;  %s19_s17 = sshll.u32 %s364_s1, 4  ;;  %s295_s0 = smov [#allocation4]   ;;  %s20_s17 = int_to_ptr.hbm [resolvable:$true] %s19_s17 }
   0x3   :  { %s21_s18 = sshll.u32 %s295_s0, 4  ;;  %s32_s21 = sshll.u32 %s365_s2, 4  ;;  %s22_s18 = int_to_ptr.vmem [resolvable:$true] %s21_s18  ;;  %s33_s21 = int_to_ptr.hbm [resolvable:$true] %s32_s21 }
   0x4   :  { %s296_s22 = smov 128   ;;  %s297_s23 = smov 8  }
   0x5   :  { %27 = dma.hbm_to_vmem [thread:$0]  %s20_s17, 256, %s22_s18, [#allocation5], %s296_s22, %s296_s22, %s297_s23  }
   0x6   :  { %s298_s24 = smov [#allocation7]   ;;  %s299_s26 = smov 64  }
   0x7   :  { %s34_s25 = sshll.u32 %s298_s24, 4  ;;  %s300_s1 = smov 4   ;;  %s35_s25 = int_to_ptr.vmem [resolvable:$true] %s34_s25 }
   0x8   :  { %40 = dma.hbm_to_vmem [thread:$0]  %s33_s21, 256, %s35_s25, [#allocation8], %s299_s26, %s299_s26, %s300_s1  }
   0x9   :  { %289 = dma.done.wait [#allocation5], 256  }
   0xa   :  { %290 = vsyncadd [#allocation5], 4294967040 }
   0xb   :  { %291 = dma.done.wait [#allocation8], 256  }
   0xc   :  { %292 = vsyncadd [#allocation8], 4294967040  ;;  %vm58_vm0 = vcmask 261120   ;;  %v337_v0 = vld [vmem:[#allocation4] sm:$0xff]  ;;  %v341_v2 = vld [vmem:[#allocation4 + $0x8] sm:$0xff]  ;;  %v301_v4 = vmov 32.0  }
   0xd   :  { %v59_v1 = vsel %vm58_vm0, %v337_v0, 0.0  ;;  %v62_v3 = vsel %vm58_vm0, %v341_v2, 0.0  ;;  %211 = vrcp.f32 %v301_v4  ;;  %v201_v24 = vld [vmem:[#allocation7 + $0x8] sm:$0xff]  ;;  %v200_v25 = vld [vmem:[#allocation7] sm:$0xff]  ;;  %vm112_vm5 = vcmask 257024   ;;  %s302_s28 = smov [#allocation9]  }
   0xe   :  { %60 = vadd.xlane.f32.xlu0 %v59_v1  ;;  %152 = vmatpush.bf16.msra.mxu0 %v201_v24  ;;  %v210_v48 = vld [vmem:[%s366_s3] ss:$0 sm:$0xff]  ;;  %s170_s29 = sshll.u32 %s302_s28, 4  ;;  %s172_s6 = sshll.u32 %s367_s4, 4  ;;  %s171_s29 = int_to_ptr.vmem [resolvable:$true] %s170_s29  ;;  %s173_s6 = int_to_ptr.hbm [resolvable:$true] %s172_s6 }
  0x12   :  { %153 = vmatpush.bf16.msra.mxu0 %v200_v25 }
  0x13   :  { %v212_v5 = vpop.eup %211 }
  0x14   :  { %v66_v6 = vmul.f32 32.0, %v212_v5  ;;  %vm70_vm1 = vweird.f32 %v212_v5 }
  0x16   :  { %63 = vadd.xlane.f32.xlu0 %v62_v3  ;;  %v67_v7 = vsub.f32 1.0, %v66_v6 }
  0x18   :  { %v68_v8 = vmul.f32 %v212_v5, %v67_v7 }
  0x1a   :  { %v69_v9 = vadd.f32 %v212_v5, %v68_v8 }
  0x1c   :  { %v71_v10 = vsel %vm70_vm1, %v212_v5, %v69_v9 }
  0x81   :  { %v61_v11 = vpop.xlane.xlu0 %60 }
  0x82   :  { %v72_v12 = vmul.f32 %v71_v10, %v61_v11 }
  0x84   :  { %v74_v13 = vsub.f32 %v337_v0, %v72_v12 }
  0x86   :  { %v76_v14 = vmul.f32 %v74_v13, %v74_v13 }
  0x88   :  { %v78_v15 = vsel %vm58_vm0, %v76_v14, 0.0 }
  0x89   :  { %79 = vadd.xlane.f32.xlu1 %v78_v15  ;;  %v64_v16 = vpop.xlane.xlu0 %63 }
  0x8a   :  { %v73_v17 = vmul.f32 %v71_v10, %v64_v16 }
  0x8c   :  { %v75_v18 = vsub.f32 %v341_v2, %v73_v17 }
  0x8e   :  { %v77_v19 = vmul.f32 %v75_v18, %v75_v18 }
  0x90   :  { %v81_v20 = vsel %vm58_vm0, %v77_v19, 0.0 }
  0x91   :  { %82 = vadd.xlane.f32.xlu1 %v81_v20 }
  0xfc   :  { %v80_v21 = vpop.xlane.xlu1 %79 }
  0xfd   :  { %v84_v22 = vmul.f32 %v80_v21, %v71_v10 }
  0xff   :  { %v86_v23 = vadd.f32 1e-05, %v84_v22 }
 0x101   :  { %213 = vrsqrt.f32 %v86_v23  ;;  %vm94_vm3 = vweird.f32 %v86_v23 }
 0x104   :  { %v83_v26 = vpop.xlane.xlu1 %82 }
 0x105   :  { %v85_v27 = vmul.f32 %v83_v26, %v71_v10 }
 0x107   :  { %v214_v28 = vpop.eup %213  ;;  %v87_v29 = vadd.f32 1e-05, %v85_v27 }
 0x108   :  { %v89_v30 = vmul.f32 %v214_v28, %v86_v23  ;;  %vm95_vm2 = vweird.f32 %v214_v28 }
 0x109   :  { %215 = vrsqrt.f32 %v87_v29  ;;  %vm96_vm4 = vmor %vm94_vm3, %vm95_vm2  ;;  %vm104_vm7 = vweird.f32 %v87_v29 }
 0x10a   :  { %v90_v31 = vmul.f32 %v214_v28, %v89_v30 }
 0x10c   :  { %v91_v32 = vmul.f32 0.5, %v90_v31 }
 0x10e   :  { %v92_v33 = vsub.f32 1.5, %v91_v32 }
 0x10f   :  { %v216_v34 = vpop.eup %215 }
 0x110   :  { %v93_v35 = vmul.f32 %v214_v28, %v92_v33  ;;  %v99_v36 = vmul.f32 %v216_v34, %v87_v29  ;;  %vm105_vm6 = vweird.f32 %v216_v34 }
 0x111   :  { %vm106_vm8 = vmor %vm104_vm7, %vm105_vm6 }
 0x112   :  { %v97_v37 = vsel %vm96_vm4, %v214_v28, %v93_v35  ;;  %v100_v38 = vmul.f32 %v216_v34, %v99_v36 }
 0x113   :  { %v108_v39 = vmul.f32 %v97_v37, %v74_v13 }
 0x114   :  { %v101_v40 = vmul.f32 0.5, %v100_v38 }
 0x115   :  { %v110_v41 = vpack.c.bf16 %v108_v39, %v108_v39 }
 0x116   :  { %v102_v42 = vsub.f32 1.5, %v101_v40 }
 0x117   :  { %113 = vst.msk [vmem:[#allocation2] sm:$0xf] %vm112_vm5, %v110_v41 }
 0x118   :  { %v103_v43 = vmul.f32 %v216_v34, %v102_v42 }
 0x11a   :  { %v107_v44 = vsel %vm106_vm8, %v216_v34, %v103_v43 }
 0x11b   :  { %v109_v45 = vmul.f32 %v107_v44, %v75_v18 }
 0x11d   :  { %v111_v46 = vpack.c.bf16 %v109_v45, %v109_v45 }
 0x11f   :  { %114 = vst.msk [vmem:[#allocation2 + $0x4] sm:$0xf] %vm112_vm5, %v111_v46 }
 0x126   :  { %v199_v47 = vld [vmem:[#allocation2] sm:$0xff] }
 0x127   :  { %198 = vmatmul.msk.bf16.vlgmr.msra.gmra.mxu0 %vm58_vm0, %v199_v47 }
 0x1a4   :  { %v155_v49 = vpop.f32.mrf.mxu0 }
 0x1a5   :  { %v156_v50 = vadd.f32 %v210_v48, %v155_v49 }
 0x1a7   :  { %v162_v51 = vadd.f32 %v156_v50, %v337_v0 }
 0x1a9   :  { %164 = vst.msk [vmem:[#allocation9] sm:$0xff] %vm58_vm0, %v162_v51 }
 0x1ac   :  { %v157_v52 = vpop.f32.mrf.mxu0 }
 0x1ad   :  { %v158_v53 = vadd.f32 %v210_v48, %v157_v52 }
 0x1af   :  { %v163_v54 = vadd.f32 %v158_v53, %v341_v2 }
 0x1b1   :  { %165 = vst.msk [vmem:[#allocation9 + $0x8] sm:$0xff] %vm58_vm0, %v163_v54 }
 0x1b2   :  { %178 = dma.vmem_to_hbm [thread:$0]  %s171_s29, 256, %s173_s6, [#allocation6], %s296_s22, %s296_s22, %s297_s23  }
 0x1b3   :  { %293 = dma.done.wait [#allocation6], 256  }
 0x1b4   :  { %294 = vsyncadd [#allocation6], 4294967040 }
 0x1b5   :  { %183 = vsyncpa [#allocation5], 1 }
 0x1b6   :  { %184 = vsyncpa [#allocation8], 1 }
 0x1b7   :  { %185 = vsyncpa [#allocation6], 1 }

</bundles_post_ra>
